<compile_context>
chip_gen: v6e
topology: v6e:2x2x1
jax: 0.10.0
libtpu: 0.0.40
codegen_flags: <defaults>
</compile_context>

<pallas_src>
import jax
import jax.numpy as jnp
from jax.experimental import pallas as pl
from jax.experimental.pallas import tpu as pltpu

HIDDEN_PAD = 128   # hidden width (100) zero-padded to one full sublane/lane tile
TM_MAX = 2048      # max points per grid step (lane-dense; sweepable 2048-8192)


def mlp_kernel(s_ref,              # SMEM (1, 1): [b4]
               x_ref,              # VMEM (1, TM)   points on lanes
               w1_ref, b1_ref,     # VMEM (128, 1), (128, 1)  (normalization folded in)
               w2_ref, b2_ref,     # VMEM (128, 128) [= w2^T], (128, 1)
               w3_ref, b3_ref,     # VMEM (128, 128) [= w3^T], (128, 1)
               w4_ref,             # VMEM (1, 128)   last-layer weight row
               o_ref):             # VMEM (1, TM)    lane-dense output
    b4 = s_ref[0, 0]
    x = x_ref[...]                                            # (1, TM)

    # Layer 1 (K=1): VPU broadcast outer product; input normalization is
    # pre-folded into w1/b1, so no per-point sub/mul is needed here.
    h = jnp.tanh(w1_ref[...] * x + b1_ref[...])               # (128, TM)

    # Layers 2 & 3: 128x128 MXU matmuls against resident transposed weights,
    # biases broadcast along lanes, EUP tanh.
    h = jnp.tanh(jnp.dot(w2_ref[...], h,
                         preferred_element_type=jnp.float32) + b2_ref[...])
    h = jnp.tanh(jnp.dot(w3_ref[...], h,
                         preferred_element_type=jnp.float32) + b3_ref[...])

    # Layer 4 (N=1): (1,128) x (128,TM) MXU mat-vec -> lane-dense (1, TM) out.
    o_ref[...] = jnp.dot(w4_ref[...], h,
                         preferred_element_type=jnp.float32) + b4


@jax.jit
def mlp_forward(x, scalars, w1, b1, w2, b2, w3, b3, w4):
    n = x.shape[0]
    h_pad = w2.shape[0]

    # Lane-dense point tile: multiple of 128, capped at TM_MAX, and about half
    # the batch so the grid has >= 2 parallel steps whenever n > 128 (v7x has
    # two TensorCores; "parallel" lets the grid shard across them).
    half = -(-n // 2)                                   # cdiv(n, 2)
    tm = max(128, min(TM_MAX, ((half + 127) // 128) * 128))
    num_tiles = pl.cdiv(n, tm)
    n_pad = num_tiles * tm

    # Points on lanes: (n, 1) -> (1, n_pad); ragged tail zero-padded in the
    # wrapper and sliced off afterwards (padded points are row-local garbage).
    x_lanes = jnp.pad(x.reshape(-1), (0, n_pad - n)).reshape(1, n_pad)

    resident = lambda i: (0, 0)   # weights stay in VMEM across the whole grid

    out = pl.pallas_call(
        mlp_kernel,
        out_shape=jax.ShapeDtypeStruct((1, n_pad), jnp.float32),
        grid=(num_tiles,),
        in_specs=[
            pl.BlockSpec((1, 1), resident,
                         memory_space=pltpu.MemorySpace.SMEM),    # b4
            pl.BlockSpec((1, tm), lambda i: (0, i)),              # x points
            pl.BlockSpec((h_pad, 1), resident),                   # w1 column
            pl.BlockSpec((h_pad, 1), resident),                   # b1 column
            pl.BlockSpec((h_pad, h_pad), resident),               # w2^T
            pl.BlockSpec((h_pad, 1), resident),                   # b2 column
            pl.BlockSpec((h_pad, h_pad), resident),               # w3^T
            pl.BlockSpec((h_pad, 1), resident),                   # b3 column
            pl.BlockSpec((1, h_pad), resident),                   # w4 row
        ],
        out_specs=pl.BlockSpec((1, tm), lambda i: (0, i)),
        compiler_params=pltpu.CompilerParams(
            dimension_semantics=("parallel",)),
    )(scalars, x_lanes, w1, b1, w2, b2, w3, b3, w4)

    return out.reshape(-1)[:n].reshape(n, 1)


def init_params(key, layer_sizes):
    """Deterministic init matching the module: xavier_normal_ weights (gain=1),
    normal(0, 1) biases.  Weights returned as [in, out] (unpadded)."""
    params = []
    for i in range(len(layer_sizes) - 1):
        fan_in, fan_out = layer_sizes[i], layer_sizes[i + 1]
        key, kw, kb = jax.random.split(key, 3)
        std = (2.0 / (fan_in + fan_out)) ** 0.5          # xavier normal, gain=1
        w = std * jax.random.normal(kw, (fan_in, fan_out), dtype=jnp.float32)
        b = jax.random.normal(kb, (1, fan_out), dtype=jnp.float32)
        params += [w, b]
    return key, params


def _pad_to(a, shape):
    return jnp.pad(a, [(0, t - s) for s, t in zip(a.shape, shape)])


def pack_params(params, mu, sigma, h_pad=HIDDEN_PAD):
    """Transpose + zero-pad weights into MXU-friendly tiles, fold the input
    normalization into layer 1, and keep only the scalar output bias in SMEM."""
    w1, b1, w2, b2, w3, b3, w4, b4 = params
    inv_sigma = 1.0 / sigma
    # tanh(((x - mu)/sigma) @ w1 + b1) == tanh(x @ (w1/sigma) + (b1 - mu*w1/sigma))
    w1f = w1 * inv_sigma                     # (1, H)
    b1f = b1 - mu * inv_sigma * w1           # (1, H)

    w1c = _pad_to(w1f.T, (h_pad, 1))         # (H, 1) -> (128, 1) column
    b1c = _pad_to(b1f.T, (h_pad, 1))
    w2t = _pad_to(w2.T, (h_pad, h_pad))      # transposed 128x128 MXU tile
    b2c = _pad_to(b2.T, (h_pad, 1))
    w3t = _pad_to(w3.T, (h_pad, h_pad))
    b3c = _pad_to(b3.T, (h_pad, 1))
    w4r = _pad_to(w4.T, (1, h_pad))          # (H, 1) -> (1, 128) row
    scalars = jnp.array([[b4[0, 0]]], dtype=jnp.float32)
    return scalars, (w1c, b1c, w2t, b2c, w3t, b3c, w4r)


def reference_forward(x, mu, sigma, params):
    h = (x - mu) / sigma
    w1, b1, w2, b2, w3, b3, w4, b4 = params
    h = jnp.tanh(h @ w1 + b1)
    h = jnp.tanh(h @ w2 + b2)
    h = jnp.tanh(h @ w3 + b3)
    return h @ w4 + b4


if __name__ == "__main__":
    layer_sizes = [1] + [100] * 3 + [1]

    key = jax.random.PRNGKey(0)
    key, params = init_params(key, layer_sizes)

    # mu_X / sigma_X statistics from 100000 uniform samples (as in __init__).
    key, kx = jax.random.split(key)
    X_stat = jax.random.uniform(kx, (100000, 1), dtype=jnp.float32)
    mu_X = jnp.mean(X_stat)
    sigma_X = jnp.std(X_stat, ddof=1)                    # torch.std is unbiased

    scalars, packed = pack_params(params, mu_X, sigma_X)

    # Input: x = linspace(0, 1, 100).unsqueeze(-1)  ->  shape (100, 1)
    x = jnp.linspace(0.0, 1.0, 100, dtype=jnp.float32).reshape(-1, 1)
    out = jax.block_until_ready(mlp_forward(x, scalars, *packed))
    ref = reference_forward(x, mu_X, sigma_X, params)
    assert out.shape == (100, 1)
    assert jnp.allclose(out, ref, atol=1e-4, rtol=1e-4), "mismatch vs JAX ref (n=100)"

    # Second check: exercises the multi-tile (grid >= 2) lane-dense path with a
    # ragged tail (n % tm != 0) so both TensorCores / pipelining are covered.
    key, kx2 = jax.random.split(key)
    x2 = jax.random.uniform(kx2, (300, 1), dtype=jnp.float32)
    out2 = jax.block_until_ready(mlp_forward(x2, scalars, *packed))
    ref2 = reference_forward(x2, mu_X, sigma_X, params)
    assert out2.shape == (300, 1)
    assert jnp.allclose(out2, ref2, atol=1e-4, rtol=1e-4), "mismatch vs JAX ref (n=300)"

    print("KERNEL_OK")
</pallas_src>

<mosaic_0001>
module attributes {stable_mosaic.version = 11 : i64} {
  func.func @mlp_kernel(%arg0: i32, %arg1: memref<1x1xf32, #tpu.memory_space<smem>>, %arg2: memref<1x128xf32, #tpu.memory_space<vmem>>, %arg3: memref<128x1xf32, #tpu.memory_space<vmem>>, %arg4: memref<128x1xf32, #tpu.memory_space<vmem>>, %arg5: memref<128x128xf32, #tpu.memory_space<vmem>>, %arg6: memref<128x1xf32, #tpu.memory_space<vmem>>, %arg7: memref<128x128xf32, #tpu.memory_space<vmem>>, %arg8: memref<128x1xf32, #tpu.memory_space<vmem>>, %arg9: memref<1x128xf32, #tpu.memory_space<vmem>>, %arg10: memref<1x128xf32, #tpu.memory_space<vmem>>) attributes {dimension_semantics = [#tpu.dimension_semantics<parallel>], iteration_bounds = array<i64: 1>, scalar_prefetch = 0 : i64, scratch_operands = 0 : i64, tpu.core_type = #tpu.core_type<tc>, window_params = [{transform_indices = @transform_0, window_bounds = array<i64: 1, 1>}, {transform_indices = @transform_1, window_bounds = array<i64: 1, 128>}, {pipeline_mode = #tpu.pipeline_mode<synchronous>, transform_indices = @transform_2, window_bounds = array<i64: 128, 1>}, {pipeline_mode = #tpu.pipeline_mode<synchronous>, transform_indices = @transform_3, window_bounds = array<i64: 128, 1>}, {pipeline_mode = #tpu.pipeline_mode<synchronous>, transform_indices = @transform_4, window_bounds = array<i64: 128, 128>}, {pipeline_mode = #tpu.pipeline_mode<synchronous>, transform_indices = @transform_5, window_bounds = array<i64: 128, 1>}, {pipeline_mode = #tpu.pipeline_mode<synchronous>, transform_indices = @transform_6, window_bounds = array<i64: 128, 128>}, {pipeline_mode = #tpu.pipeline_mode<synchronous>, transform_indices = @transform_7, window_bounds = array<i64: 128, 1>}, {pipeline_mode = #tpu.pipeline_mode<synchronous>, transform_indices = @transform_8, window_bounds = array<i64: 1, 128>}, {transform_indices = @transform_9, window_bounds = array<i64: 1, 128>}]} {
    %c0 = arith.constant 0 : index
    %c0_0 = arith.constant 0 : index
    %0 = memref.load %arg1[%c0, %c0_0] : memref<1x1xf32, #tpu.memory_space<smem>>
    %c0_1 = arith.constant 0 : index
    %c0_2 = arith.constant 0 : index
    %1 = vector.load %arg2[%c0_1, %c0_2] : memref<1x128xf32, #tpu.memory_space<vmem>>, vector<1x128xf32>
    %c0_3 = arith.constant 0 : index
    %c0_4 = arith.constant 0 : index
    %2 = vector.load %arg3[%c0_3, %c0_4] : memref<128x1xf32, #tpu.memory_space<vmem>>, vector<128x1xf32>
    %3 = vector.broadcast %2 : vector<128x1xf32> to vector<128x128xf32>
    %4 = vector.broadcast %1 : vector<1x128xf32> to vector<128x128xf32>
    %5 = arith.mulf %3, %4 : vector<128x128xf32>
    %c0_5 = arith.constant 0 : index
    %c0_6 = arith.constant 0 : index
    %6 = vector.load %arg4[%c0_5, %c0_6] : memref<128x1xf32, #tpu.memory_space<vmem>>, vector<128x1xf32>
    %7 = vector.broadcast %6 : vector<128x1xf32> to vector<128x128xf32>
    %8 = arith.addf %5, %7 : vector<128x128xf32>
    %9 = math.tanh %8 : vector<128x128xf32>
    %c0_7 = arith.constant 0 : index
    %c0_8 = arith.constant 0 : index
    %10 = vector.load %arg5[%c0_7, %c0_8] : memref<128x128xf32, #tpu.memory_space<vmem>>, vector<128x128xf32>
    %cst = arith.constant dense<0.000000e+00> : vector<128x128xf32>
    %11 = tpu.matmul %10, %9, %cst {dimension_numbers = #tpu.dot_dimension_numbers<[1], [0], [0], [1], [0, 0, 1, 1], [], []>} : vector<128x128xf32>, vector<128x128xf32>, vector<128x128xf32> -> vector<128x128xf32>
    %c0_9 = arith.constant 0 : index
    %c0_10 = arith.constant 0 : index
    %12 = vector.load %arg6[%c0_9, %c0_10] : memref<128x1xf32, #tpu.memory_space<vmem>>, vector<128x1xf32>
    %13 = vector.broadcast %12 : vector<128x1xf32> to vector<128x128xf32>
    %14 = arith.addf %11, %13 : vector<128x128xf32>
    %15 = math.tanh %14 : vector<128x128xf32>
    %c0_11 = arith.constant 0 : index
    %c0_12 = arith.constant 0 : index
    %16 = vector.load %arg7[%c0_11, %c0_12] : memref<128x128xf32, #tpu.memory_space<vmem>>, vector<128x128xf32>
    %cst_13 = arith.constant dense<0.000000e+00> : vector<128x128xf32>
    %17 = tpu.matmul %16, %15, %cst_13 {dimension_numbers = #tpu.dot_dimension_numbers<[1], [0], [0], [1], [0, 0, 1, 1], [], []>} : vector<128x128xf32>, vector<128x128xf32>, vector<128x128xf32> -> vector<128x128xf32>
    %c0_14 = arith.constant 0 : index
    %c0_15 = arith.constant 0 : index
    %18 = vector.load %arg8[%c0_14, %c0_15] : memref<128x1xf32, #tpu.memory_space<vmem>>, vector<128x1xf32>
    %19 = vector.broadcast %18 : vector<128x1xf32> to vector<128x128xf32>
    %20 = arith.addf %17, %19 : vector<128x128xf32>
    %21 = math.tanh %20 : vector<128x128xf32>
    %c0_16 = arith.constant 0 : index
    %c0_17 = arith.constant 0 : index
    %22 = vector.load %arg9[%c0_16, %c0_17] : memref<1x128xf32, #tpu.memory_space<vmem>>, vector<1x128xf32>
    %cst_18 = arith.constant dense<0.000000e+00> : vector<1x128xf32>
    %23 = tpu.matmul %22, %21, %cst_18 {dimension_numbers = #tpu.dot_dimension_numbers<[1], [0], [0], [1], [0, 0, 1, 1], [], []>} : vector<1x128xf32>, vector<128x128xf32>, vector<1x128xf32> -> vector<1x128xf32>
    %24 = vector.broadcast %0 : f32 to vector<1x128xf32>
    %25 = arith.addf %23, %24 : vector<1x128xf32>
    %c0_19 = arith.constant 0 : index
    %c0_20 = arith.constant 0 : index
    %26 = vector.load %arg10[%c0_19, %c0_20] : memref<1x128xf32, #tpu.memory_space<vmem>>, vector<1x128xf32>
    tpu.vector_store %arg10[%c0_19, %c0_20], %25 {strides = array<i32>} : memref<1x128xf32, #tpu.memory_space<vmem>>, vector<1x128xf32>,
    return
  }
  func.func @transform_0(%arg0: i32) -> (i32, i32) {
    %c0_i32 = arith.constant 0 : i32
    %c0_i32_0 = arith.constant 0 : i32
    %c0_i32_1 = arith.constant 0 : i32
    return %c0_i32, %c0_i32_0 : i32, i32
  }
  func.func @transform_1(%arg0: i32) -> (i32, i32) {
    %c0_i32 = arith.constant 0 : i32
    %c0_i32_0 = arith.constant 0 : i32
    return %c0_i32, %arg0 : i32, i32
  }
  func.func @transform_2(%arg0: i32) -> (i32, i32) {
    %c0_i32 = arith.constant 0 : i32
    %c0_i32_0 = arith.constant 0 : i32
    %c0_i32_1 = arith.constant 0 : i32
    return %c0_i32, %c0_i32_0 : i32, i32
  }
  func.func @transform_3(%arg0: i32) -> (i32, i32) {
    %c0_i32 = arith.constant 0 : i32
    %c0_i32_0 = arith.constant 0 : i32
    %c0_i32_1 = arith.constant 0 : i32
    return %c0_i32, %c0_i32_0 : i32, i32
  }
  func.func @transform_4(%arg0: i32) -> (i32, i32) {
    %c0_i32 = arith.constant 0 : i32
    %c0_i32_0 = arith.constant 0 : i32
    %c0_i32_1 = arith.constant 0 : i32
    return %c0_i32, %c0_i32_0 : i32, i32
  }
  func.func @transform_5(%arg0: i32) -> (i32, i32) {
    %c0_i32 = arith.constant 0 : i32
    %c0_i32_0 = arith.constant 0 : i32
    %c0_i32_1 = arith.constant 0 : i32
    return %c0_i32, %c0_i32_0 : i32, i32
  }
  func.func @transform_6(%arg0: i32) -> (i32, i32) {
    %c0_i32 = arith.constant 0 : i32
    %c0_i32_0 = arith.constant 0 : i32
    %c0_i32_1 = arith.constant 0 : i32
    return %c0_i32, %c0_i32_0 : i32, i32
  }
  func.func @transform_7(%arg0: i32) -> (i32, i32) {
    %c0_i32 = arith.constant 0 : i32
    %c0_i32_0 = arith.constant 0 : i32
    %c0_i32_1 = arith.constant 0 : i32
    return %c0_i32, %c0_i32_0 : i32, i32
  }
  func.func @transform_8(%arg0: i32) -> (i32, i32) {
    %c0_i32 = arith.constant 0 : i32
    %c0_i32_0 = arith.constant 0 : i32
    %c0_i32_1 = arith.constant 0 : i32
    return %c0_i32, %c0_i32_0 : i32, i32
  }
  func.func @transform_9(%arg0: i32) -> (i32, i32) {
    %c0_i32 = arith.constant 0 : i32
    %c0_i32_0 = arith.constant 0 : i32
    return %c0_i32, %arg0 : i32, i32
  }
}

</mosaic_0001>

<bundles_post_ra>
// kernel: mlp_forward.1
= control target key start
LH: loop header
LB: loop body
LE: loop exit
PB: predicated region body
PF: predicated region fallthrough
CT: control target
= control target key end

     0   :  { %v1234_v0 = vmov 0   ;;  %vm1236_vm0 = vmmov 0   ;;  %s1640_s3 = inlined_call_operand.vmem [shape: f32[128,1], index: 3, kind: input, shape index: {}]   ;;  %s1641_s2 = inlined_call_operand.vmem [shape: f32[128,1], index: 2, kind: input, shape index: {}]   ;;  %s1642_s5 = inlined_call_operand.vmem [shape: f32[128,1], index: 5, kind: input, shape index: {}]   ;;  %s1643_s4 = inlined_call_operand.vmem [shape: f32[128,128], index: 4, kind: input, shape index: {}]   ;;  %s1644_s7 = inlined_call_operand.vmem [shape: f32[128,1], index: 7, kind: input, shape index: {}]   ;;  %s1645_s1 = inlined_call_operand.vmem [shape: f32[1,128], index: 1, kind: input, shape index: {}]   ;;  %s1646_s6 = inlined_call_operand.vmem [shape: f32[128,128], index: 6, kind: input, shape index: {}]   ;;  %s1647_s8 = inlined_call_operand.vmem [shape: f32[1,128], index: 8, kind: input, shape index: {}]   ;;  %s1648_s0 = inlined_call_operand.<no memory space> [shape: f32[1,1], index: 0, kind: input, shape index: {}]   ;;  %s1649_s9 = inlined_call_operand.vmem [shape: f32[1,128], index: 9, kind: output, shape index: {}]  }
   0x1   :  { %1137 = vset.pattern.permute.xlu1 %v1234_v0  ;;  %1136 = vset.pattern.permute.xlu0 %v1234_v0  ;;  %v168_v1 = vld [vmem:[%s1640_s3 + $0x78] sm:$0xff]  ;;  %v49_v3 = vld [vmem:[%s1641_s2 + $0x70] sm:$0xff]  ;;  %v48_v4 = vld [vmem:[%s1641_s2 + $0x68] sm:$0xff] }
   0x2   :  { %v50_v2 = vld [vmem:[%s1641_s2 + $0x78] sm:$0xff]  ;;  %246 = vperm.xlu1 %1137, %v168_v1   ;;  %v167_v5 = vld [vmem:[%s1640_s3 + $0x70] sm:$0xff]  ;;  %v47_v6 = vld [vmem:[%s1641_s2 + $0x60] sm:$0xff] }
   0x3   :  { %128 = vperm.xlu0 %1136, %v50_v2   ;;  %v166_v7 = vld [vmem:[%s1640_s3 + $0x68] sm:$0xff]  ;;  %v46_v8 = vld [vmem:[%s1641_s2 + $0x58] sm:$0xff]  ;;  %v165_v9 = vld [vmem:[%s1640_s3 + $0x60] sm:$0xff] }
   0x4   :  { %v45_v10 = vld [vmem:[%s1641_s2 + $0x50] sm:$0xff]  ;;  %v164_v11 = vld [vmem:[%s1640_s3 + $0x58] sm:$0xff]  ;;  %v44_v12 = vld [vmem:[%s1641_s2 + $0x48] sm:$0xff] }
   0x5   :  { %v163_v13 = vld [vmem:[%s1640_s3 + $0x50] sm:$0xff]  ;;  %v43_v14 = vld [vmem:[%s1641_s2 + $0x40] sm:$0xff]  ;;  %v162_v15 = vld [vmem:[%s1640_s3 + $0x48] sm:$0xff] }
   0x6   :  { %118 = vperm.xlu1 %1137, %v48_v4   ;;  %v42_v16 = vld [vmem:[%s1641_s2 + $0x38] sm:$0xff]  ;;  %v161_v17 = vld [vmem:[%s1640_s3 + $0x40] sm:$0xff]  ;;  %v41_v18 = vld [vmem:[%s1641_s2 + $0x30] sm:$0xff] }
   0x7   :  { %123 = vperm.xlu0 %1136, %v49_v3   ;;  %v160_v19 = vld [vmem:[%s1640_s3 + $0x38] sm:$0xff]  ;;  %v40_v20 = vld [vmem:[%s1641_s2 + $0x28] sm:$0xff]  ;;  %v159_v21 = vld [vmem:[%s1640_s3 + $0x30] sm:$0xff] }
   0x8   :  { %v39_v22 = vld [vmem:[%s1641_s2 + $0x20] sm:$0xff]  ;;  %v158_v23 = vld [vmem:[%s1640_s3 + $0x28] sm:$0xff]  ;;  %v38_v24 = vld [vmem:[%s1641_s2 + $0x18] sm:$0xff] }
   0x9   :  { %v157_v25 = vld [vmem:[%s1640_s3 + $0x20] sm:$0xff]  ;;  %v37_v26 = vld [vmem:[%s1641_s2 + $0x10] sm:$0xff]  ;;  %v156_v27 = vld [vmem:[%s1640_s3 + $0x18] sm:$0xff] }
   0xa   :  { %113 = vperm.xlu1 %1137, %v47_v6   ;;  %v36_v28 = vld [vmem:[%s1641_s2 + $0x8] sm:$0xff]  ;;  %v155_v29 = vld [vmem:[%s1640_s3 + $0x10] sm:$0xff]  ;;  %v35_v30 = vld [vmem:[%s1641_s2] sm:$0xff] }
   0xb   :  { %241 = vperm.xlu0 %1136, %v167_v5   ;;  %v154_v31 = vld [vmem:[%s1640_s3 + $0x8] sm:$0xff]  ;;  %v153_v32 = vld [vmem:[%s1640_s3] sm:$0xff]  ;;  %v312_v33 = vld [vmem:[%s1642_s5 + $0x78] sm:$0xff] }
   0xc   :  { %v311_v34 = vld [vmem:[%s1642_s5 + $0x70] sm:$0xff]  ;;  %v310_v35 = vld [vmem:[%s1642_s5 + $0x68] sm:$0xff]  ;;  %v309_v36 = vld [vmem:[%s1642_s5 + $0x60] sm:$0xff] }
   0xd   :  { %v308_v37 = vld [vmem:[%s1642_s5 + $0x58] sm:$0xff]  ;;  %v307_v38 = vld [vmem:[%s1642_s5 + $0x50] sm:$0xff]  ;;  %v306_v39 = vld [vmem:[%s1642_s5 + $0x48] sm:$0xff] }
   0xe   :  { %108 = vperm.xlu1 %1137, %v46_v8   ;;  %v305_v40 = vld [vmem:[%s1642_s5 + $0x40] sm:$0xff]  ;;  %v304_v42 = vld [vmem:[%s1642_s5 + $0x38] sm:$0xff]  ;;  %v303_v43 = vld [vmem:[%s1642_s5 + $0x30] sm:$0xff] }
   0xf   :  { %236 = vperm.xlu0 %1136, %v166_v7   ;;  %v281_v41 = vld [vmem:[%s1643_s4] sm:$0xff]  ;;  %v302_v44 = vld [vmem:[%s1642_s5 + $0x28] sm:$0xff]  ;;  %v300_v46 = vld [vmem:[%s1642_s5 + $0x18] sm:$0xff] }
  0x10   :  { %1018 = vmatprep.mubr.f32.mxu0 %v281_v41  ;;  %v301_v45 = vld [vmem:[%s1642_s5 + $0x20] sm:$0xff]  ;;  %v299_v47 = vld [vmem:[%s1642_s5 + $0x10] sm:$0xff]  ;;  %v298_v48 = vld [vmem:[%s1642_s5 + $0x8] sm:$0xff] }
  0x11   :  { %v297_v49 = vld [vmem:[%s1642_s5] sm:$0xff]  ;;  %v585_v50 = vld [vmem:[%s1644_s7 + $0x78] sm:$0xff]  ;;  %v584_v51 = vld [vmem:[%s1644_s7 + $0x70] sm:$0xff] }
  0x12   :  { %103 = vperm.xlu1 %1137, %v45_v10   ;;  %v583_v52 = vld [vmem:[%s1644_s7 + $0x68] sm:$0xff]  ;;  %v582_v53 = vld [vmem:[%s1644_s7 + $0x60] sm:$0xff]  ;;  %v581_v54 = vld [vmem:[%s1644_s7 + $0x58] sm:$0xff] }
  0x13   :  { %231 = vperm.xlu0 %1136, %v165_v9   ;;  %v580_v55 = vld [vmem:[%s1644_s7 + $0x50] sm:$0xff]  ;;  %v579_v56 = vld [vmem:[%s1644_s7 + $0x48] sm:$0xff]  ;;  %v578_v57 = vld [vmem:[%s1644_s7 + $0x40] sm:$0xff] }
  0x14   :  { %v577_v58 = vld [vmem:[%s1644_s7 + $0x38] sm:$0xff]  ;;  %v576_v59 = vld [vmem:[%s1644_s7 + $0x30] sm:$0xff]  ;;  %v575_v60 = vld [vmem:[%s1644_s7 + $0x28] sm:$0xff] }
  0x15   :  { %v574_v61 = vld [vmem:[%s1644_s7 + $0x20] sm:$0xff]  ;;  %v573_v62 = vld [vmem:[%s1644_s7 + $0x18] sm:$0xff]  ;;  %v572_v63 = vld [vmem:[%s1644_s7 + $0x10] sm:$0xff] }
  0x16   :  { %98 = vperm.xlu1 %1137, %v44_v12   ;;  %v1479_v0 = vld [vmem:[%s1645_s1] ss:$0 sm:$0xff]  ;;  %v571_v1 = vld [vmem:[%s1644_s7 + $0x8] sm:$0xff] }
  0x17   :  { %226 = vperm.xlu0 %1136, %v164_v11   ;;  %v570_v2 = vld [vmem:[%s1644_s7] sm:$0xff] }
  0x1a   :  { %93 = vperm.xlu1 %1137, %v43_v14  }
  0x1b   :  { %221 = vperm.xlu0 %1136, %v163_v13  }
  0x1e   :  { %88 = vperm.xlu1 %1137, %v42_v16  }
  0x1f   :  { %216 = vperm.xlu0 %1136, %v162_v15  }
  0x22   :  { %83 = vperm.xlu1 %1137, %v41_v18  }
  0x23   :  { %211 = vperm.xlu0 %1136, %v161_v17  }
  0x26   :  { %78 = vperm.xlu1 %1137, %v40_v20  }
  0x27   :  { %206 = vperm.xlu0 %1136, %v160_v19  }
  0x2a   :  { %73 = vperm.xlu1 %1137, %v39_v22  }
  0x2b   :  { %201 = vperm.xlu0 %1136, %v159_v21  }
  0x2e   :  { %68 = vperm.xlu1 %1137, %v38_v24  }
  0x2f   :  { %196 = vperm.xlu0 %1136, %v158_v23  }
  0x32   :  { %63 = vperm.xlu1 %1137, %v37_v26  }
  0x33   :  { %191 = vperm.xlu0 %1136, %v157_v25  }
  0x36   :  { %58 = vperm.xlu1 %1137, %v36_v28  }
  0x37   :  { %186 = vperm.xlu0 %1136, %v156_v27  }
  0x3a   :  { %53 = vperm.xlu1 %1137, %v35_v30  }
  0x3b   :  { %181 = vperm.xlu0 %1136, %v155_v29  }
  0x3e   :  { %171 = vperm.xlu1 %1137, %v153_v32  }
  0x3f   :  { %176 = vperm.xlu0 %1136, %v154_v31  }
  0x42   :  { %385 = vperm.xlu1 %1137, %v311_v34  }
  0x43   :  { %390 = vperm.xlu0 %1136, %v312_v33  }
  0x46   :  { %375 = vperm.xlu1 %1137, %v309_v36  }
  0x47   :  { %380 = vperm.xlu0 %1136, %v310_v35  }
  0x4a   :  { %365 = vperm.xlu1 %1137, %v307_v38  }
  0x4b   :  { %370 = vperm.xlu0 %1136, %v308_v37  }
  0x4e   :  { %355 = vperm.xlu1 %1137, %v305_v40  }
  0x4f   :  { %360 = vperm.xlu0 %1136, %v306_v39  }
  0x52   :  { %345 = vperm.xlu1 %1137, %v303_v43  }
  0x53   :  { %350 = vperm.xlu0 %1136, %v304_v42  }
  0x56   :  { %335 = vperm.xlu1 %1137, %v301_v45  }
  0x57   :  { %340 = vperm.xlu0 %1136, %v302_v44  }
  0x5a   :  { %325 = vperm.xlu1 %1137, %v299_v47  }
  0x5b   :  { %330 = vperm.xlu0 %1136, %v300_v46  }
  0x5e   :  { %315 = vperm.xlu1 %1137, %v297_v49  }
  0x5f   :  { %320 = vperm.xlu0 %1136, %v298_v48  }
  0x62   :  { %658 = vperm.xlu1 %1137, %v584_v51  }
  0x63   :  { %663 = vperm.xlu0 %1136, %v585_v50  }
  0x66   :  { %648 = vperm.xlu1 %1137, %v582_v53  }
  0x67   :  { %653 = vperm.xlu0 %1136, %v583_v52  }
  0x6a   :  { %638 = vperm.xlu1 %1137, %v580_v55  }
  0x6b   :  { %643 = vperm.xlu0 %1136, %v581_v54  }
  0x6e   :  { %628 = vperm.xlu1 %1137, %v578_v57  }
  0x6f   :  { %633 = vperm.xlu0 %1136, %v579_v56  }
  0x72   :  { %618 = vperm.xlu1 %1137, %v576_v59  }
  0x73   :  { %623 = vperm.xlu0 %1136, %v577_v58  }
  0x76   :  { %608 = vperm.xlu1 %1137, %v574_v61  }
  0x77   :  { %613 = vperm.xlu0 %1136, %v575_v60  }
  0x7a   :  { %598 = vperm.xlu1 %1137, %v572_v63  }
  0x7b   :  { %603 = vperm.xlu0 %1136, %v573_v62  }
  0x7d   :  { %v247_v3 = vpop.permute.xlu1 %246 }
  0x7e   :  { %v129_v4 = vpop.permute.xlu0 %128  ;;  %588 = vperm.xlu1 %1137, %v570_v2  }
  0x7f   :  { %v152_v5 = vmul.f32 %v1479_v0, %v129_v4  ;;  %593 = vperm.xlu0 %1136, %v571_v1  }
  0x81   :  { %v264_v6 = vadd.f32 %v247_v3, %v152_v5  ;;  %v119_v8 = vpop.permute.xlu1 %118 }
  0x82   :  { %v124_v7 = vpop.permute.xlu0 %123  ;;  %v150_v13 = vmul.f32 %v1479_v0, %v119_v8 }
  0x83   :  { %1138 = vtanh.f32 %v264_v6  ;;  %v151_v9 = vmul.f32 %v1479_v0, %v124_v7 }
  0x85   :  { %v114_v11 = vpop.permute.xlu1 %113 }
  0x86   :  { %v242_v10 = vpop.permute.xlu0 %241  ;;  %v149_v17 = vmul.f32 %v1479_v0, %v114_v11 }
  0x87   :  { %v263_v12 = vadd.f32 %v242_v10, %v151_v9 }
  0x89   :  { %1140 = vtanh.f32 %v263_v12  ;;  %v109_v15 = vpop.permute.xlu1 %108 }
  0x8a   :  { %v237_v14 = vpop.permute.xlu0 %236  ;;  %v148_v22 = vmul.f32 %v1479_v0, %v109_v15 }
  0x8b   :  { %v262_v16 = vadd.f32 %v237_v14, %v150_v13 }
  0x8d   :  { %1142 = vtanh.f32 %v262_v16  ;;  %v104_v19 = vpop.permute.xlu1 %103 }
  0x8e   :  { %v232_v18 = vpop.permute.xlu0 %231  ;;  %v147_v26 = vmul.f32 %v1479_v0, %v104_v19  ;;  %v282_v19 = vld [vmem:[%s1643_s4 + $0x8] sm:$0xff] }
  0x8f   :  { %v261_v20 = vadd.f32 %v232_v18, %v149_v17 }
  0x90   :  { %v1139_v21 = vpop.eup %1138 }
  0x91   :  { %1144 = vtanh.f32 %v261_v20  ;;  %986 = vmatprep.subr.mxu0 %v1139_v21  ;;  %v99_v24 = vpop.permute.xlu1 %98  ;;  %v283_v20 = vld [vmem:[%s1643_s4 + $0x10] sm:$0xff] }
  0x92   :  { %v227_v23 = vpop.permute.xlu0 %226  ;;  %987 = vmatpush3.msra.mxu0 %v1139_v21  ;;  %v146_v31 = vmul.f32 %v1479_v0, %v99_v24  ;;  %v284_v21 = vld [vmem:[%s1643_s4 + $0x18] sm:$0xff]  ;;  %v287_v24 = vld [vmem:[%s1643_s4 + $0x30] sm:$0xff] }
  0x93   :  { %v260_v25 = vadd.f32 %v227_v23, %v148_v22  ;;  %v285_v22 = vld [vmem:[%s1643_s4 + $0x20] sm:$0xff]  ;;  %v286_v23 = vld [vmem:[%s1643_s4 + $0x28] sm:$0xff] }
  0x95   :  { %1146 = vtanh.f32 %v260_v25  ;;  %v94_v29 = vpop.permute.xlu1 %93  ;;  %v288_v25 = vld [vmem:[%s1643_s4 + $0x38] sm:$0xff] }
  0x96   :  { %v1141_v27 = vpop.eup %1140  ;;  %v222_v28 = vpop.permute.xlu0 %221  ;;  %v145_v36 = vmul.f32 %v1479_v0, %v94_v29  ;;  %v292_v29 = vld [vmem:[%s1643_s4 + $0x58] sm:$0xff] }
  0x97   :  { %v259_v30 = vadd.f32 %v222_v28, %v147_v26  ;;  %988 = vmatprep.subr.mxu0 %v1141_v27  ;;  %v289_v26 = vld [vmem:[%s1643_s4 + $0x40] sm:$0xff]  ;;  %v291_v28 = vld [vmem:[%s1643_s4 + $0x50] sm:$0xff] }
  0x98   :  { %989 = vmatpush3.msra.mxu0 %v1141_v27  ;;  %v290_v27 = vld [vmem:[%s1643_s4 + $0x48] sm:$0xff] }
  0x99   :  { %1148 = vtanh.f32 %v259_v30  ;;  %v89_v34 = vpop.permute.xlu1 %88  ;;  %v293_v30 = vld [vmem:[%s1643_s4 + $0x60] sm:$0xff] }
  0x9a   :  { %v1143_v32 = vpop.eup %1142  ;;  %v217_v33 = vpop.permute.xlu0 %216  ;;  %v144_v41 = vmul.f32 %v1479_v0, %v89_v34  ;;  %v554_v34 = vld [vmem:[%s1646_s6] sm:$0xff] }
  0x9b   :  { %v258_v35 = vadd.f32 %v217_v33, %v146_v31  ;;  %990 = vmatprep.subr.mxu0 %v1143_v32  ;;  %v294_v31 = vld [vmem:[%s1643_s4 + $0x68] sm:$0xff]  ;;  %v296_v33 = vld [vmem:[%s1643_s4 + $0x78] sm:$0xff]  ;;  %1074 = vmatprep.mubr.f32.mxu1 %v554_v34 }
  0x9c   :  { %991 = vmatpush3.msra.mxu0 %v1143_v32  ;;  %v295_v32 = vld [vmem:[%s1643_s4 + $0x70] sm:$0xff] }
  0x9d   :  { %1150 = vtanh.f32 %v258_v35  ;;  %v84_v39 = vpop.permute.xlu1 %83 }
  0x9e   :  { %v1145_v37 = vpop.eup %1144  ;;  %v212_v38 = vpop.permute.xlu0 %211  ;;  %v143_v46 = vmul.f32 %v1479_v0, %v84_v39 }
  0x9f   :  { %v257_v40 = vadd.f32 %v212_v38, %v145_v36  ;;  %992 = vmatprep.subr.mxu0 %v1145_v37 }
  0xa0   :  { %993 = vmatpush3.msra.mxu0 %v1145_v37 }
  0xa1   :  { %1152 = vtanh.f32 %v257_v40  ;;  %v79_v44 = vpop.permute.xlu1 %78 }
  0xa2   :  { %v1147_v42 = vpop.eup %1146  ;;  %v207_v43 = vpop.permute.xlu0 %206  ;;  %v142_v51 = vmul.f32 %v1479_v0, %v79_v44 }
  0xa3   :  { %v256_v45 = vadd.f32 %v207_v43, %v144_v41  ;;  %994 = vmatprep.subr.mxu0 %v1147_v42 }
  0xa4   :  { %995 = vmatpush3.msra.mxu0 %v1147_v42 }
  0xa5   :  { %1154 = vtanh.f32 %v256_v45  ;;  %v74_v49 = vpop.permute.xlu1 %73 }
  0xa6   :  { %v1149_v47 = vpop.eup %1148  ;;  %v202_v48 = vpop.permute.xlu0 %201  ;;  %v141_v56 = vmul.f32 %v1479_v0, %v74_v49 }
  0xa7   :  { %v255_v50 = vadd.f32 %v202_v48, %v143_v46  ;;  %996 = vmatprep.subr.mxu0 %v1149_v47 }
  0xa8   :  { %997 = vmatpush3.msra.mxu0 %v1149_v47 }
  0xa9   :  { %1156 = vtanh.f32 %v255_v50  ;;  %v69_v54 = vpop.permute.xlu1 %68 }
  0xaa   :  { %v1151_v52 = vpop.eup %1150  ;;  %v197_v53 = vpop.permute.xlu0 %196  ;;  %v140_v61 = vmul.f32 %v1479_v0, %v69_v54 }
  0xab   :  { %v254_v55 = vadd.f32 %v197_v53, %v142_v51  ;;  %998 = vmatprep.subr.mxu0 %v1151_v52 }
  0xac   :  { %999 = vmatpush3.msra.mxu0 %v1151_v52 }
  0xad   :  { %1158 = vtanh.f32 %v254_v55  ;;  %v64_v59 = vpop.permute.xlu1 %63 }
  0xae   :  { %v1153_v57 = vpop.eup %1152  ;;  %v192_v58 = vpop.permute.xlu0 %191  ;;  %v139_v3 = vmul.f32 %v1479_v0, %v64_v59 }
  0xaf   :  { %v253_v60 = vadd.f32 %v192_v58, %v141_v56  ;;  %1000 = vmatprep.subr.mxu0 %v1153_v57 }
  0xb0   :  { %1001 = vmatpush3.msra.mxu0 %v1153_v57 }
  0xb1   :  { %1160 = vtanh.f32 %v253_v60  ;;  %v59_v1 = vpop.permute.xlu1 %58 }
  0xb2   :  { %v1155_v62 = vpop.eup %1154  ;;  %v187_v63 = vpop.permute.xlu0 %186  ;;  %v138_v8 = vmul.f32 %v1479_v0, %v59_v1 }
  0xb3   :  { %v252_v2 = vadd.f32 %v187_v63, %v140_v61  ;;  %1002 = vmatprep.subr.mxu0 %v1155_v62 }
  0xb4   :  { %1003 = vmatpush3.msra.mxu0 %v1155_v62 }
  0xb5   :  { %1162 = vtanh.f32 %v252_v2  ;;  %v54_v6 = vpop.permute.xlu1 %53 }
  0xb6   :  { %v1157_v4 = vpop.eup %1156  ;;  %v182_v5 = vpop.permute.xlu0 %181  ;;  %v137_v9 = vmul.f32 %v1479_v0, %v54_v6 }
  0xb7   :  { %v251_v7 = vadd.f32 %v182_v5, %v139_v3  ;;  %1004 = vmatprep.subr.mxu0 %v1157_v4 }
  0xb8   :  { %1005 = vmatpush3.msra.mxu0 %v1157_v4 }
  0xb9   :  { %1164 = vtanh.f32 %v251_v7  ;;  %v172_v12 = vpop.permute.xlu1 %171 }
  0xba   :  { %v1159_v10 = vpop.eup %1158  ;;  %v177_v11 = vpop.permute.xlu0 %176  ;;  %v249_v14 = vadd.f32 %v172_v12, %v137_v9 }
  0xbb   :  { %v250_v13 = vadd.f32 %v177_v11, %v138_v8  ;;  %1006 = vmatprep.subr.mxu0 %v1159_v10 }
  0xbc   :  { %1007 = vmatpush3.msra.mxu0 %v1159_v10 }
  0xbd   :  { %1166 = vtanh.f32 %v250_v13  ;;  %v386_v43 = vpop.permute.xlu1 %385 }
  0xbe   :  { %v1161_v15 = vpop.eup %1160  ;;  %1168 = vtanh.f32 %v249_v14  ;;  %v391_v41 = vpop.permute.xlu0 %390 }
  0xbf   :  { %1008 = vmatprep.subr.mxu0 %v1161_v15 }
  0xc0   :  { %1009 = vmatpush3.msra.mxu0 %v1161_v15 }
  0xc1   :  { %v376_v48 = vpop.permute.xlu1 %375 }
  0xc2   :  { %v1163_v16 = vpop.eup %1162  ;;  %v381_v46 = vpop.permute.xlu0 %380 }
  0xc3   :  { %1010 = vmatprep.subr.mxu0 %v1163_v16 }
  0xc4   :  { %1011 = vmatpush3.msra.mxu0 %v1163_v16 }
  0xc5   :  { %v366_v53 = vpop.permute.xlu1 %365 }
  0xc6   :  { %v1165_v17 = vpop.eup %1164  ;;  %v371_v51 = vpop.permute.xlu0 %370 }
  0xc7   :  { %1012 = vmatprep.subr.mxu0 %v1165_v17 }
  0xc8   :  { %1013 = vmatpush3.msra.mxu0 %v1165_v17 }
  0xc9   :  { %v356_v61 = vpop.permute.xlu1 %355 }
  0xca   :  { %v1167_v18 = vpop.eup %1166  ;;  %v361_v57 = vpop.permute.xlu0 %360 }
  0xcb   :  { %1014 = vmatprep.subr.mxu0 %v1167_v18  ;;  %v1169_v0 = vpop.eup %1168 }
  0xcc   :  { %1015 = vmatpush3.msra.mxu0 %v1167_v18 }
  0xcd   :  { %1016 = vmatprep.subr.mxu0 %v1169_v0  ;;  %v346_v3 = vpop.permute.xlu1 %345 }
  0xce   :  { %1017 = vmatpush3.msra.mxu0 %v1169_v0  ;;  %v351_v1 = vpop.permute.xlu0 %350 }
  0xcf   :  { %1019 = vmatmul.mubr.f32.vlgmr.msra.gmra.mxu0 %v282_v19 }
  0xd0   :  { %1021 = vmatprep.mubr.f32.mxu0 %v283_v20 }
  0xd1   :  { %v336_v9 = vpop.permute.xlu1 %335 }
  0xd2   :  { %v341_v6 = vpop.permute.xlu0 %340 }
  0xd3   :  { %1022 = vmatmul.mubr.f32.gmra.mxu0 %v284_v21 }
  0xd4   :  { %1024 = vmatprep.mubr.f32.mxu0 %v285_v22 }
  0xd5   :  { %v326_v17 = vpop.permute.xlu1 %325 }
  0xd6   :  { %v331_v14 = vpop.permute.xlu0 %330 }
  0xd7   :  { %1025 = vmatmul.mubr.f32.gmra.mxu0 %v286_v23 }
  0xd8   :  { %1027 = vmatprep.mubr.f32.mxu0 %v287_v24 }
  0xd9   :  { %v316_v24 = vpop.permute.xlu1 %315 }
  0xda   :  { %v321_v21 = vpop.permute.xlu0 %320 }
  0xdb   :  { %1028 = vmatmul.mubr.f32.gmra.mxu0 %v288_v25 }
  0xdc   :  { %1030 = vmatprep.mubr.f32.mxu0 %v289_v26 }
  0xdf   :  { %1031 = vmatmul.mubr.f32.gmra.mxu0 %v290_v27 }
  0xe0   :  { %1033 = vmatprep.mubr.f32.mxu0 %v291_v28 }
  0xe3   :  { %1034 = vmatmul.mubr.f32.gmra.mxu0 %v292_v29 }
  0xe4   :  { %1036 = vmatprep.mubr.f32.mxu0 %v293_v30 }
  0xe7   :  { %1037 = vmatmul.mubr.f32.gmra.mxu0 %v294_v31 }
  0xe8   :  { %1039 = vmatprep.mubr.f32.mxu0 %v295_v32 }
  0xeb   :  { %1040 = vmatmul.mubr.f32.gmra.mxu0 %v296_v33 }
 0x18f   :  { %v1551_v35 = vpop.f32.mrf.mxu0 }
 0x190   :  { %v465_v22 = vadd.f32 %v1551_v35, %v321_v21  ;;  %v555_v35 = vld [vmem:[%s1646_s6 + $0x8] sm:$0xff] }
 0x191   :  { %v1553_v36 = vpop.f32.mrf.mxu0 }
 0x192   :  { %v460_v25 = vadd.f32 %v1553_v36, %v316_v24  ;;  %v556_v36 = vld [vmem:[%s1646_s6 + $0x10] sm:$0xff] }
 0x193   :  { %v1023_v37 = vpop.f32.mrf.mxu0 }
 0x194   :  { %v475_v18 = vadd.f32 %v1023_v37, %v331_v14  ;;  %v557_v37 = vld [vmem:[%s1646_s6 + $0x18] sm:$0xff] }
 0x195   :  { %v1555_v38 = vpop.f32.mrf.mxu0 }
 0x196   :  { %v470_v19 = vadd.f32 %v1555_v38, %v326_v17  ;;  %v558_v38 = vld [vmem:[%s1646_s6 + $0x20] sm:$0xff] }
 0x197   :  { %v1026_v39 = vpop.f32.mrf.mxu0 }
 0x198   :  { %v485_v12 = vadd.f32 %v1026_v39, %v341_v6  ;;  %v559_v39 = vld [vmem:[%s1646_s6 + $0x28] sm:$0xff] }
 0x199   :  { %v479_v40 = vpop.f32.mrf.mxu0 }
 0x19a   :  { %v480_v15 = vadd.f32 %v479_v40, %v336_v9  ;;  %v560_v40 = vld [vmem:[%s1646_s6 + $0x30] sm:$0xff] }
 0x19b   :  { %v1029_v42 = vpop.f32.mrf.mxu0 }
 0x19c   :  { %v495_v7 = vadd.f32 %v1029_v42, %v351_v1  ;;  %v562_v42 = vld [vmem:[%s1646_s6 + $0x40] sm:$0xff] }
 0x19d   :  { %v489_v44 = vpop.f32.mrf.mxu0 }
 0x19e   :  { %v490_v10 = vadd.f32 %v489_v44, %v346_v3  ;;  %v564_v44 = vld [vmem:[%s1646_s6 + $0x50] sm:$0xff] }
 0x19f   :  { %v1032_v45 = vpop.f32.mrf.mxu0 }
 0x1a0   :  { %v505_v4 = vadd.f32 %v1032_v45, %v361_v57  ;;  %v565_v45 = vld [vmem:[%s1646_s6 + $0x58] sm:$0xff]  ;;  %v664_v57 = vpop.permute.xlu0 %663 }
 0x1a1   :  { %v499_v47 = vpop.f32.mrf.mxu0 }
 0x1a2   :  { %v500_v5 = vadd.f32 %v499_v47, %v356_v61  ;;  %v567_v47 = vld [vmem:[%s1646_s6 + $0x68] sm:$0xff] }
 0x1a3   :  { %v1035_v49 = vpop.f32.mrf.mxu0 }
 0x1a4   :  { %v515_v63 = vadd.f32 %v1035_v49, %v371_v51  ;;  %v569_v49 = vld [vmem:[%s1646_s6 + $0x78] sm:$0xff] }
 0x1a5   :  { %v509_v50 = vpop.f32.mrf.mxu0 }
 0x1a6   :  { %v510_v2 = vadd.f32 %v509_v50, %v366_v53  ;;  %v1235_v50 = vmov 0.0  }
 0x1a7   :  { %v1038_v52 = vpop.f32.mrf.mxu0  ;;  %1098 = vmatprep.subr.mxu0 %v1235_v50  ;;  %1130 = vmatprep.mubr.msk.f32.mxu0 %vm1236_vm0, %v1235_v50 }
 0x1a8   :  { %v525_v59 = vadd.f32 %v1038_v52, %v381_v46  ;;  %v566_v46 = vld [vmem:[%s1646_s6 + $0x60] sm:$0xff] }
 0x1a9   :  { %v519_v54 = vpop.f32.mrf.mxu0 }
 0x1aa   :  { %v520_v62 = vadd.f32 %v519_v54, %v376_v48  ;;  %v568_v48 = vld [vmem:[%s1646_s6 + $0x70] sm:$0xff] }
 0x1ab   :  { %v1041_v55 = vpop.f32.mrf.mxu0 }
 0x1ac   :  { %v535_v56 = vadd.f32 %v1041_v55, %v391_v41  ;;  %v561_v41 = vld [vmem:[%s1646_s6 + $0x38] sm:$0xff] }
 0x1ad   :  { %v529_v58 = vpop.f32.mrf.mxu0 }
 0x1ae   :  { %1170 = vtanh.f32 %v535_v56  ;;  %v530_v60 = vadd.f32 %v529_v58, %v386_v43  ;;  %v563_v43 = vld [vmem:[%s1646_s6 + $0x48] sm:$0xff] }
 0x1b0   :  { %1172 = vtanh.f32 %v530_v60 }
 0x1b1   :  { %1174 = vtanh.f32 %v525_v59  ;;  %v659_v59 = vpop.permute.xlu1 %658 }
 0x1b2   :  { %1176 = vtanh.f32 %v520_v62  ;;  %v654_v62 = vpop.permute.xlu0 %653 }
 0x1b3   :  { %1178 = vtanh.f32 %v515_v63 }
 0x1b4   :  { %1180 = vtanh.f32 %v510_v2 }
 0x1b5   :  { %1182 = vtanh.f32 %v505_v4  ;;  %v649_v1 = vpop.permute.xlu1 %648 }
 0x1b6   :  { %1184 = vtanh.f32 %v500_v5  ;;  %v644_v4 = vpop.permute.xlu0 %643 }
 0x1b7   :  { %1186 = vtanh.f32 %v495_v7 }
 0x1b8   :  { %1188 = vtanh.f32 %v490_v10 }
 0x1b9   :  { %1190 = vtanh.f32 %v485_v12  ;;  %v639_v6 = vpop.permute.xlu1 %638 }
 0x1ba   :  { %1192 = vtanh.f32 %v480_v15  ;;  %v634_v10 = vpop.permute.xlu0 %633 }
 0x1bb   :  { %v1171_v8 = vpop.eup %1170  ;;  %1194 = vtanh.f32 %v475_v18 }
 0x1bc   :  { %1042 = vmatprep.subr.mxu1 %v1171_v8  ;;  %1196 = vtanh.f32 %v470_v19 }
 0x1bd   :  { %v1173_v11 = vpop.eup %1172  ;;  %1043 = vmatpush3.msra.mxu1 %v1171_v8  ;;  %1198 = vtanh.f32 %v465_v22  ;;  %v629_v14 = vpop.permute.xlu1 %628 }
 0x1be   :  { %1044 = vmatprep.subr.mxu1 %v1173_v11  ;;  %v1175_v13 = vpop.eup %1174  ;;  %1200 = vtanh.f32 %v460_v25  ;;  %v624_v17 = vpop.permute.xlu0 %623 }
 0x1bf   :  { %1045 = vmatpush3.msra.mxu1 %v1173_v11  ;;  %v1177_v16 = vpop.eup %1176 }
 0x1c0   :  { %1046 = vmatprep.subr.mxu1 %v1175_v13  ;;  %v1179_v0 = vpop.eup %1178 }
 0x1c1   :  { %1047 = vmatpush3.msra.mxu1 %v1175_v13  ;;  %v1181_v20 = vpop.eup %1180 }
 0x1c2   :  { %1048 = vmatprep.subr.mxu1 %v1177_v16  ;;  %v1183_v23 = vpop.eup %1182  ;;  %v614_v21 = vpop.permute.xlu0 %613 }
 0x1c3   :  { %1049 = vmatpush3.msra.mxu1 %v1177_v16  ;;  %v1185_v26 = vpop.eup %1184 }
 0x1c4   :  { %1050 = vmatprep.subr.mxu1 %v1179_v0  ;;  %v1187_v27 = vpop.eup %1186 }
 0x1c5   :  { %1051 = vmatpush3.msra.mxu1 %v1179_v0  ;;  %v1189_v28 = vpop.eup %1188  ;;  %v619_v0 = vpop.permute.xlu1 %618 }
 0x1c6   :  { %1052 = vmatprep.subr.mxu1 %v1181_v20  ;;  %v1191_v29 = vpop.eup %1190 }
 0x1c7   :  { %1053 = vmatpush3.msra.mxu1 %v1181_v20  ;;  %v1193_v30 = vpop.eup %1192 }
 0x1c8   :  { %1054 = vmatprep.subr.mxu1 %v1183_v23  ;;  %v1195_v31 = vpop.eup %1194 }
 0x1c9   :  { %1055 = vmatpush3.msra.mxu1 %v1183_v23  ;;  %v1197_v32 = vpop.eup %1196  ;;  %v609_v24 = vpop.permute.xlu1 %608 }
 0x1ca   :  { %1056 = vmatprep.subr.mxu1 %v1185_v26  ;;  %v1199_v33 = vpop.eup %1198 }
 0x1cb   :  { %1057 = vmatpush3.msra.mxu1 %v1185_v26  ;;  %v1201_v34 = vpop.eup %1200 }
 0x1cc   :  { %1058 = vmatprep.subr.mxu1 %v1187_v27 }
 0x1cd   :  { %1059 = vmatpush3.msra.mxu1 %v1187_v27 }
 0x1ce   :  { %1060 = vmatprep.subr.mxu1 %v1189_v28 }
 0x1cf   :  { %1061 = vmatpush3.msra.mxu1 %v1189_v28 }
 0x1d0   :  { %1062 = vmatprep.subr.mxu1 %v1191_v29 }
 0x1d1   :  { %1063 = vmatpush3.msra.mxu1 %v1191_v29  ;;  %v604_v29 = vpop.permute.xlu0 %603 }
 0x1d2   :  { %1064 = vmatprep.subr.mxu1 %v1193_v30 }
 0x1d3   :  { %1065 = vmatpush3.msra.mxu1 %v1193_v30 }
 0x1d4   :  { %1066 = vmatprep.subr.mxu1 %v1195_v31 }
 0x1d5   :  { %1067 = vmatpush3.msra.mxu1 %v1195_v31 }
 0x1d6   :  { %1068 = vmatprep.subr.mxu1 %v1197_v32 }
 0x1d7   :  { %1069 = vmatpush3.msra.mxu1 %v1197_v32  ;;  %v599_v32 = vpop.permute.xlu1 %598 }
 0x1d8   :  { %1070 = vmatprep.subr.mxu1 %v1199_v33 }
 0x1d9   :  { %1071 = vmatpush3.msra.mxu1 %v1199_v33 }
 0x1da   :  { %1072 = vmatprep.subr.mxu1 %v1201_v34 }
 0x1db   :  { %1073 = vmatpush3.msra.mxu1 %v1201_v34 }
 0x1dc   :  { %1075 = vmatmul.mubr.f32.vlgmr.msra.gmra.mxu1 %v555_v35 }
 0x1dd   :  { %1077 = vmatprep.mubr.f32.mxu1 %v556_v36 }
 0x1e0   :  { %1078 = vmatmul.mubr.f32.gmra.mxu1 %v557_v37  ;;  %v594_v37 = vpop.permute.xlu0 %593 }
 0x1e1   :  { %1080 = vmatprep.mubr.f32.mxu1 %v558_v38 }
 0x1e4   :  { %1081 = vmatmul.mubr.f32.gmra.mxu1 %v559_v39 }
 0x1e5   :  { %1083 = vmatprep.mubr.f32.mxu1 %v560_v40  ;;  %v589_v40 = vpop.permute.xlu1 %588 }
 0x1e8   :  { %1084 = vmatmul.mubr.f32.gmra.mxu1 %v561_v41 }
 0x1e9   :  { %1086 = vmatprep.mubr.f32.mxu1 %v562_v42 }
 0x1ec   :  { %1087 = vmatmul.mubr.f32.gmra.mxu1 %v563_v43 }
 0x1ed   :  { %1089 = vmatprep.mubr.f32.mxu1 %v564_v44 }
 0x1f0   :  { %1090 = vmatmul.mubr.f32.gmra.mxu1 %v565_v45 }
 0x1f1   :  { %1092 = vmatprep.mubr.f32.mxu1 %v566_v46 }
 0x1f4   :  { %1093 = vmatmul.mubr.f32.gmra.mxu1 %v567_v47 }
 0x1f5   :  { %1095 = vmatprep.mubr.f32.mxu1 %v568_v48 }
 0x1f8   :  { %1096 = vmatmul.mubr.f32.gmra.mxu1 %v569_v49 }
 0x29c   :  { %v1607_v51 = vpop.f32.mrf.mxu1 }
 0x29d   :  { %v738_v38 = vadd.f32 %v1607_v51, %v594_v37  ;;  %v827_v51 = vld [vmem:[%s1647_s8] sm:$0x1] }
 0x29e   :  { %v1609_v52 = vpop.f32.mrf.mxu1 }
 0x29f   :  { %v733_v41 = vadd.f32 %v1609_v52, %v589_v40 }
 0x2a0   :  { %v1079_v53 = vpop.f32.mrf.mxu1 }
 0x2a1   :  { %v748_v33 = vadd.f32 %v1079_v53, %v604_v29  ;;  %v828_v53 = vstv %s1648_s0 }
 0x2a2   :  { %v1611_v54 = vpop.f32.mrf.mxu1 }
 0x2a3   :  { %v743_v35 = vadd.f32 %v1611_v54, %v599_v32 }
 0x2a4   :  { %v1082_v55 = vpop.f32.mrf.mxu1 }
 0x2a5   :  { %v758_v27 = vadd.f32 %v1082_v55, %v614_v21 }
 0x2a6   :  { %v752_v56 = vpop.f32.mrf.mxu1 }
 0x2a7   :  { %v753_v30 = vadd.f32 %v752_v56, %v609_v24 }
 0x2a8   :  { %v1085_v58 = vpop.f32.mrf.mxu1 }
 0x2a9   :  { %v768_v22 = vadd.f32 %v1085_v58, %v624_v17 }
 0x2aa   :  { %v762_v60 = vpop.f32.mrf.mxu1 }
 0x2ab   :  { %v763_v25 = vadd.f32 %v762_v60, %v619_v0 }
 0x2ac   :  { %v1088_v61 = vpop.f32.mrf.mxu1 }
 0x2ad   :  { %v778_v19 = vadd.f32 %v1088_v61, %v634_v10 }
 0x2ae   :  { %v772_v63 = vpop.f32.mrf.mxu1 }
 0x2af   :  { %v773_v20 = vadd.f32 %v772_v63, %v629_v14 }
 0x2b0   :  { %v1091_v2 = vpop.f32.mrf.mxu1 }
 0x2b1   :  { %v788_v16 = vadd.f32 %v1091_v2, %v644_v4 }
 0x2b2   :  { %v782_v3 = vpop.f32.mrf.mxu1 }
 0x2b3   :  { %v783_v18 = vadd.f32 %v782_v3, %v639_v6 }
 0x2b4   :  { %v1094_v5 = vpop.f32.mrf.mxu1 }
 0x2b5   :  { %v798_v12 = vadd.f32 %v1094_v5, %v654_v62 }
 0x2b6   :  { %v792_v7 = vpop.f32.mrf.mxu1 }
 0x2b7   :  { %v793_v15 = vadd.f32 %v792_v7, %v649_v1 }
 0x2b8   :  { %v1097_v8 = vpop.f32.mrf.mxu1 }
 0x2b9   :  { %v808_v9 = vadd.f32 %v1097_v8, %v664_v57 }
 0x2ba   :  { %v802_v11 = vpop.f32.mrf.mxu1 }
 0x2bb   :  { %1202 = vtanh.f32 %v808_v9  ;;  %v803_v13 = vadd.f32 %v802_v11, %v659_v59 }
 0x2bd   :  { %1204 = vtanh.f32 %v803_v13 }
 0x2be   :  { %1206 = vtanh.f32 %v798_v12 }
 0x2bf   :  { %1208 = vtanh.f32 %v793_v15 }
 0x2c0   :  { %1210 = vtanh.f32 %v788_v16 }
 0x2c1   :  { %1212 = vtanh.f32 %v783_v18 }
 0x2c2   :  { %1214 = vtanh.f32 %v778_v19 }
 0x2c3   :  { %1216 = vtanh.f32 %v773_v20 }
 0x2c4   :  { %1218 = vtanh.f32 %v768_v22 }
 0x2c5   :  { %1220 = vtanh.f32 %v763_v25 }
 0x2c6   :  { %1222 = vtanh.f32 %v758_v27 }
 0x2c7   :  { %1224 = vtanh.f32 %v753_v30 }
 0x2c8   :  { %v1203_v23 = vpop.eup %1202  ;;  %1226 = vtanh.f32 %v748_v33 }
 0x2c9   :  { %1099 = vmatpush3.msra.mxu0 %v1203_v23  ;;  %1228 = vtanh.f32 %v743_v35 }
 0x2ca   :  { %v1205_v26 = vpop.eup %1204  ;;  %1100 = vmatprep.subr.mxu0 %v1235_v50  ;;  %1230 = vtanh.f32 %v738_v38 }
 0x2cb   :  { %1101 = vmatpush3.msra.mxu0 %v1205_v26  ;;  %v1207_v28 = vpop.eup %1206  ;;  %1232 = vtanh.f32 %v733_v41 }
 0x2cc   :  { %1102 = vmatprep.subr.mxu0 %v1235_v50  ;;  %v1209_v31 = vpop.eup %1208 }
 0x2cd   :  { %1103 = vmatpush3.msra.mxu0 %v1207_v28  ;;  %v1211_v34 = vpop.eup %1210 }
 0x2ce   :  { %1104 = vmatprep.subr.mxu0 %v1235_v50  ;;  %v1213_v36 = vpop.eup %1212 }
 0x2cf   :  { %1105 = vmatpush3.msra.mxu0 %v1209_v31  ;;  %v1215_v39 = vpop.eup %1214 }
 0x2d0   :  { %1106 = vmatprep.subr.mxu0 %v1235_v50  ;;  %v1217_v42 = vpop.eup %1216 }
 0x2d1   :  { %1107 = vmatpush3.msra.mxu0 %v1211_v34  ;;  %v1219_v43 = vpop.eup %1218 }
 0x2d2   :  { %1108 = vmatprep.subr.mxu0 %v1235_v50  ;;  %v1221_v44 = vpop.eup %1220 }
 0x2d3   :  { %1109 = vmatpush3.msra.mxu0 %v1213_v36  ;;  %v1223_v45 = vpop.eup %1222 }
 0x2d4   :  { %1110 = vmatprep.subr.mxu0 %v1235_v50  ;;  %v1225_v46 = vpop.eup %1224 }
 0x2d5   :  { %1111 = vmatpush3.msra.mxu0 %v1215_v39  ;;  %v1227_v47 = vpop.eup %1226 }
 0x2d6   :  { %1112 = vmatprep.subr.mxu0 %v1235_v50  ;;  %v1229_v48 = vpop.eup %1228 }
 0x2d7   :  { %1113 = vmatpush3.msra.mxu0 %v1217_v42  ;;  %v1231_v49 = vpop.eup %1230 }
 0x2d8   :  { %1114 = vmatprep.subr.mxu0 %v1235_v50  ;;  %v1233_v52 = vpop.eup %1232 }
 0x2d9   :  { %1115 = vmatpush3.msra.mxu0 %v1219_v43 }
 0x2da   :  { %1116 = vmatprep.subr.mxu0 %v1235_v50 }
 0x2db   :  { %1117 = vmatpush3.msra.mxu0 %v1221_v44 }
 0x2dc   :  { %1118 = vmatprep.subr.mxu0 %v1235_v50 }
 0x2dd   :  { %1119 = vmatpush3.msra.mxu0 %v1223_v45 }
 0x2de   :  { %1120 = vmatprep.subr.mxu0 %v1235_v50 }
 0x2df   :  { %1121 = vmatpush3.msra.mxu0 %v1225_v46 }
 0x2e0   :  { %1122 = vmatprep.subr.mxu0 %v1235_v50 }
 0x2e1   :  { %1123 = vmatpush3.msra.mxu0 %v1227_v47 }
 0x2e2   :  { %1124 = vmatprep.subr.mxu0 %v1235_v50 }
 0x2e3   :  { %1125 = vmatpush3.msra.mxu0 %v1229_v48 }
 0x2e4   :  { %1126 = vmatprep.subr.mxu0 %v1235_v50 }
 0x2e5   :  { %1127 = vmatpush3.msra.mxu0 %v1231_v49 }
 0x2e6   :  { %1128 = vmatprep.subr.mxu0 %v1235_v50 }
 0x2e7   :  { %1129 = vmatpush3.msra.mxu0 %v1233_v52 }
 0x2e8   :  { %1131 = vmatmul.mubr.f32.vlgmr.msra.gmra.mxu0 %v827_v51 }
 0x3a8   :  { %v895_v54 = vpop.f32.mrf.mxu0 }
 0x3a9   :  { %v896_v55 = vadd.f32 %v895_v54, %v828_v53 }
 0x3aa   :  { %v1132_v56 = vpop.f32.mrf.mxu0 }
 0x3ab   :  { %899 = vst [vmem:[%s1649_s9] sm:$0x1] %v896_v55 }

</bundles_post_ra>
